<compile_context>
chip_gen: v5e
topology: v5e:2x2
jax: 0.10.0
libtpu: 0.0.40
codegen_flags: <defaults>
</compile_context>

<pallas_src>
import jax
import jax.numpy as jnp
from jax.experimental import pallas as pl
from jax.experimental.pallas import tpu as pltpu

_K = 784          # 28 * 28
_K_PAD = 896      # 7 * 128  (lane-aligned contraction dim)
_SUBLANE = 8
_DEFAULT_TILE_B = 512   # fits comfortably in v7x's 32 MiB scoped VMEM when
                        # double-buffered (512*896*2B*2 ~ 1.75 MiB in bf16)


def _round_up(x, m):
    return (x + m - 1) // m * m


def _fused_matvec_kernel(x_ref, w_ref, o_ref):
    # x_ref: (TILE_B, K_PAD) activation tile
    # w_ref: (1, K_PAD)      fused weight row (resident across all tiles)
    # o_ref: (TILE_B, 1)     f32 logits
    #
    # Upcast to f32 in-register so accumulation is f32 even for bf16 inputs,
    # then VPU elementwise multiply + XLU cross-lane reduce (no MXU needed).
    x32 = x_ref[...].astype(jnp.float32)
    w32 = w_ref[...].astype(jnp.float32)
    o_ref[...] = jnp.sum(x32 * w32, axis=-1, keepdims=True).astype(o_ref.dtype)


def net_forward(x, w1, w2, *, compute_dtype=jnp.bfloat16, tile_b=_DEFAULT_TILE_B):
    """Pallas equivalent of Net.forward.

    x  : any shape whose trailing dims flatten to 784 (e.g. [B, 1, 28, 28])
    w1 : [H, 784]  == layer1.weight (PyTorch layout)
    w2 : [1, H]    == layer2.weight (PyTorch layout)
    returns [B, 1] float32 logits.
    """
    # --- weight fusion (exact: the net has no bias and no activation) -------
    # fused[0, k] = sum_h w2[0, h] * w1[h, k]   so   x @ fused.T == layer2(layer1(x))
    fused = w2.astype(jnp.float32) @ w1.astype(jnp.float32)          # (1, 784)
    fused = jnp.pad(fused, ((0, 0), (0, _K_PAD - _K))).astype(compute_dtype)

    # --- activation prep (flatten + K pad + dtype cast, fused by XLA) -------
    x2d = x.reshape(-1, _K)
    B = x2d.shape[0]

    tb = _round_up(min(tile_b, _round_up(B, _SUBLANE)), _SUBLANE)
    B_pad = _round_up(B, tb)
    x_p = jnp.pad(x2d, ((0, B_pad - B), (0, _K_PAD - _K))).astype(compute_dtype)

    num_tiles = B_pad // tb
    itemsize = jnp.dtype(compute_dtype).itemsize
    bytes_accessed = (B_pad * _K_PAD * itemsize      # x
                      + _K_PAD * itemsize            # fused weight
                      + B_pad * 4)                   # out (f32)

    out = pl.pallas_call(
        _fused_matvec_kernel,
        out_shape=jax.ShapeDtypeStruct((B_pad, 1), jnp.float32),
        grid=(num_tiles,),
        in_specs=[
            # x: one (tb, K_PAD) tile per grid step -> double-buffered DMA.
            pl.BlockSpec((tb, _K_PAD), lambda i: (i, 0)),
            # fused weight row: pinned (same block every step), stays in VMEM.
            pl.BlockSpec((1, _K_PAD), lambda i: (0, 0)),
        ],
        out_specs=pl.BlockSpec((tb, 1), lambda i: (i, 0)),
        compiler_params=pltpu.CompilerParams(
            # Batch tiles are independent: lets v7x shard across its 2 TCs.
            dimension_semantics=("parallel",),
        ),
        cost_estimate=pl.CostEstimate(
            flops=2 * B_pad * _K_PAD,
            transcendentals=0,
            bytes_accessed=bytes_accessed,
        ),
    )(x_p, fused)

    return out[:B]


if __name__ == "__main__":
    hidden = 32
    batch = 8

    key = jax.random.PRNGKey(0)
    k_x, k_w1, k_w2 = jax.random.split(key, 3)

    # Deterministic "init1" / "init2" with PyTorch Linear weight shapes:
    #   layer1.weight : (hidden, 784),  layer2.weight : (1, hidden)
    init1 = jax.random.normal(k_w1, (hidden, 784), dtype=jnp.float32) * 0.02
    init2 = jax.random.normal(k_w2, (1, hidden), dtype=jnp.float32) * 0.02

    # MNIST-like NCHW input.
    x = jax.random.normal(k_x, (batch, 1, 28, 28), dtype=jnp.float32)

    # Plain-JAX reference of the PyTorch forward (two explicit matmuls).
    ref = x.reshape(-1, 784) @ init1.T @ init2.T

    # f32 run: exact-composition check at tight tolerance.
    out_f32 = jax.block_until_ready(
        net_forward(x, init1, init2, compute_dtype=jnp.float32))
    assert out_f32.shape == (batch, 1)
    assert jnp.allclose(out_f32, ref, atol=1e-4, rtol=1e-4)

    # bf16 run: the serving config from the perf review (halves HBM traffic),
    # f32 accumulation inside the kernel; loose-but-safe tolerance.
    out_bf16 = jax.block_until_ready(
        net_forward(x, init1, init2, compute_dtype=jnp.bfloat16))
    assert out_bf16.shape == (batch, 1)
    assert jnp.allclose(out_bf16, ref, atol=5e-3, rtol=5e-2)

    print("KERNEL_OK")
</pallas_src>

<mosaic_0001>
module attributes {stable_mosaic.version = 11 : i64} {
  func.func @_fused_matvec_kernel(%arg0: i32, %arg1: memref<8x896xf32, #tpu.memory_space<vmem>>, %arg2: memref<1x896xf32, #tpu.memory_space<vmem>>, %arg3: memref<8x1xf32, #tpu.memory_space<vmem>>) attributes {dimension_semantics = [#tpu.dimension_semantics<parallel>], iteration_bounds = array<i64: 1>, scalar_prefetch = 0 : i64, scratch_operands = 0 : i64, tpu.core_type = #tpu.core_type<tc>, window_params = [{transform_indices = @transform_0, window_bounds = array<i64: 8, 896>}, {pipeline_mode = #tpu.pipeline_mode<synchronous>, transform_indices = @transform_1, window_bounds = array<i64: 1, 896>}, {transform_indices = @transform_2, window_bounds = array<i64: 8, 1>}]} {
    %c0 = arith.constant 0 : index
    %c0_0 = arith.constant 0 : index
    %0 = vector.load %arg1[%c0, %c0_0] : memref<8x896xf32, #tpu.memory_space<vmem>>, vector<8x896xf32>
    %c0_1 = arith.constant 0 : index
    %c0_2 = arith.constant 0 : index
    %1 = vector.load %arg2[%c0_1, %c0_2] : memref<1x896xf32, #tpu.memory_space<vmem>>, vector<1x896xf32>
    %2 = vector.broadcast %1 : vector<1x896xf32> to vector<8x896xf32>
    %3 = arith.mulf %0, %2 : vector<8x896xf32>
    %cst = arith.constant dense<0.000000e+00> : vector<8xf32>
    %4 = vector.multi_reduction <add>, %3, %cst [1] : vector<8x896xf32> to vector<8xf32>
    %5 = vector.shape_cast %4 : vector<8xf32> to vector<8x1xf32>
    %c0_3 = arith.constant 0 : index
    %c0_4 = arith.constant 0 : index
    %6 = vector.load %arg3[%c0_3, %c0_4] : memref<8x1xf32, #tpu.memory_space<vmem>>, vector<8x1xf32>
    tpu.vector_store %arg3[%c0_3, %c0_4], %5 {strides = array<i32>} : memref<8x1xf32, #tpu.memory_space<vmem>>, vector<8x1xf32>,
    return
  }
  func.func @transform_0(%arg0: i32) -> (i32, i32) {
    %c0_i32 = arith.constant 0 : i32
    %c0_i32_0 = arith.constant 0 : i32
    return %arg0, %c0_i32 : i32, i32
  }
  func.func @transform_1(%arg0: i32) -> (i32, i32) {
    %c0_i32 = arith.constant 0 : i32
    %c0_i32_0 = arith.constant 0 : i32
    %c0_i32_1 = arith.constant 0 : i32
    return %c0_i32, %c0_i32_0 : i32, i32
  }
  func.func @transform_2(%arg0: i32) -> (i32, i32) {
    %c0_i32 = arith.constant 0 : i32
    %c0_i32_0 = arith.constant 0 : i32
    return %arg0, %c0_i32 : i32, i32
  }
}

</mosaic_0001>

<bundles_post_ra>
// kernel: tpu_custom_call.1
= control target key start
LH: loop header
LB: loop body
LE: loop exit
PB: predicated region body
PF: predicated region fallthrough
CT: control target
= control target key end

     0   :  { %7 = vsyncpa [#allocation3], 0  ;;  %s165_s0 = inlined_call_operand.hbm [shape: f32[8,896], index: 0, kind: input, shape index: {}]   ;;  %s166_s1 = inlined_call_operand.hbm [shape: f32[1,896], index: 1, kind: input, shape index: {}]   ;;  %s167_s2 = inlined_call_operand.vmem [shape: f32[8,1], index: 2, kind: output, shape index: {}]  }
   0x1   :  { %s14_s11 = sshll.u32 %s165_s0, 4  ;;  %s15_s11 = int_to_ptr.hbm [resolvable:$true] %s14_s11 }
   0x2   :  { %8 = vsyncpa [#allocation5], 0  ;;  %s139_s12 = smov [#allocation2]   ;;  %s25_s16 = sshll.u32 %s166_s1, 4  ;;  %s26_s16 = int_to_ptr.hbm [resolvable:$true] %s25_s16 }
   0x3   :  { %s16_s13 = sshll.u32 %s139_s12, 4  ;;  %s140_s17 = smov [#allocation4]   ;;  %s17_s13 = int_to_ptr.vmem [resolvable:$true] %s16_s13 }
   0x4   :  { %19 = dma.hbm_to_vmem [thread:$0]  %s15_s11, 896, %s17_s13, [#allocation3]  }
   0x5   :  { %s27_s18 = sshll.u32 %s140_s17, 4  ;;  %s28_s18 = int_to_ptr.vmem [resolvable:$true] %s27_s18 }
   0x6   :  { %30 = dma.hbm_to_vmem [thread:$0]  %s26_s16, 112, %s28_s18, [#allocation5]  }
   0x7   :  { %135 = dma.done.wait [#allocation3], 896  }
   0x8   :  { %136 = vsyncadd [#allocation3], 4294966400 }
   0x9   :  { %137 = dma.done.wait [#allocation5], 112  }
   0xa   :  { %138 = vsyncadd [#allocation5], 4294967184  ;;  %v39_v0 = vld [vmem:[#allocation2] sm:$0xff]  ;;  %v40_v1 = vld [vmem:[#allocation2 + $0x8] sm:$0xff]  ;;  %vm77_vm0 = vcmask 7168  }
   0xb   :  { %v41_v2 = vld [vmem:[#allocation2 + $0x10] sm:$0xff]  ;;  %v46_v3 = vld [vmem:[#allocation4] sm:$0xff]  ;;  %v43_v13 = vld [vmem:[#allocation2 + $0x20] sm:$0xff] }
   0xc   :  { %v48_v4 = vperm.slane %v46_v3, 0  ;;  %v49_v5 = vperm.slane %v46_v3, 1  ;;  %v50_v6 = vperm.slane %v46_v3, 2  ;;  %v51_v7 = vperm.slane %v46_v3, 3  ;;  %v42_v8 = vld [vmem:[#allocation2 + $0x18] sm:$0xff]  ;;  %v44_v17 = vld [vmem:[#allocation2 + $0x28] sm:$0xff] }
   0xd   :  { %v52_v9 = vperm.slane %v46_v3, 4  ;;  %v53_v14 = vperm.slane %v46_v3, 5  ;;  %v54_v18 = vperm.slane %v46_v3, 6  ;;  %v45_v21 = vld [vmem:[#allocation2 + $0x30] sm:$0xff] }
   0xe   :  { %v62_v10 = vmul.f32 %v48_v4, %v39_v0  ;;  %v63_v11 = vmul.f32 %v49_v5, %v40_v1  ;;  %v64_v12 = vmul.f32 %v50_v6, %v41_v2  ;;  %v65_v15 = vmul.f32 %v51_v7, %v42_v8 }
   0xf   :  { %v66_v19 = vmul.f32 %v52_v9, %v43_v13  ;;  %v67_v22 = vmul.f32 %v53_v14, %v44_v17  ;;  %v68_v24 = vmul.f32 %v54_v18, %v45_v21 }
  0x10   :  { %v69_v16 = vadd.f32 %v63_v11, %v62_v10 }
  0x12   :  { %v70_v20 = vadd.f32 %v69_v16, %v64_v12 }
  0x14   :  { %v71_v23 = vadd.f32 %v70_v20, %v65_v15 }
  0x16   :  { %v72_v25 = vadd.f32 %v71_v23, %v66_v19 }
  0x18   :  { %v73_v26 = vadd.f32 %v72_v25, %v67_v22 }
  0x1a   :  { %v74_v27 = vadd.f32 %v73_v26, %v68_v24 }
  0x1c   :  { %75 = vadd.xlane.f32.xlu0 %v74_v27 }
  0x8f   :  { %v76_v28 = vpop.xlane.xlu0 %75 }
  0x90   :  { %78 = vst.msk [vmem:[%s167_s2] sm:$0xff] %vm77_vm0, %v76_v28 }
  0x91   :  { %83 = vsyncpa [#allocation3], 1 }
  0x92   :  { %84 = vsyncpa [#allocation5], 1 }

</bundles_post_ra>
